<compile_context>
chip_gen: v7x
topology: tpu7x:2x2x1
jax: 0.10.0
libtpu: 0.0.40
codegen_flags: <defaults>
</compile_context>

<pallas_src>
import functools

import jax
import jax.numpy as jnp
from jax.experimental import pallas as pl
from jax.experimental.pallas import tpu as pltpu


def _round_up(x, m):
    return ((x + m - 1) // m) * m


def _and_matmul_kernel(x_ref, sm_ref, o_ref, acc_ref, *, scale):
    """(TB, TK) x (TK, TN) tile matmul with f32 accumulation + AndLayer epilogue."""
    k = pl.program_id(2)

    @pl.when(k == 0)
    def _init():
        acc_ref[...] = jnp.zeros_like(acc_ref)

    acc_ref[...] += jnp.dot(
        x_ref[...], sm_ref[...], preferred_element_type=jnp.float32
    )

    @pl.when(k == pl.num_programs(2) - 1)
    def _finalize():
        biased = acc_ref[...] - 0.5
        # leaky_relu(b, 0.01) == max(b, 0.01*b); the 2*alpha factor is folded
        # into `scale`.
        o_ref[...] = (scale * jnp.maximum(biased, 0.01 * biased)).astype(o_ref.dtype)


def and_layer_forward(x, weights, default_alpha=1.0, compute_dtype=None):
    """x: (B, F), weights: (F, A) -> (B, A); matches AndLayer.forward."""
    B, F = x.shape
    F2, A = weights.shape
    assert F == F2, "feature dims of x and weights must match"

    # Compute dtype for the MXU operands.  Default = x.dtype (f32 for exact
    # parity); pass jnp.bfloat16 on v6e/v7x for native MXU rate + halved DMA.
    if compute_dtype is None:
        compute_dtype = x.dtype
    compute_dtype = jnp.dtype(compute_dtype)
    out_dtype = jnp.result_type(x.dtype, weights.dtype)

    # ---- one-shot column softmax (tiny; fused by XLA in the wrapper) --------
    sm = jax.nn.softmax(weights.astype(jnp.float32), axis=0).astype(compute_dtype)
    x_c = x.astype(compute_dtype)

    # ---- generation-aware VMEM budget ---------------------------------------
    try:
        info = pltpu.get_tpu_info()
        vmem_cap = int(getattr(info, "vmem_capacity_bytes", 64 * 1024 * 1024))
    except Exception:
        vmem_cap = 64 * 1024 * 1024                   # conservative (v7x-sized)
    budget = int(vmem_cap * 0.4)                      # v7x ~25 MiB, v5e/v6e ~51 MiB
    vmem_limit = int(vmem_cap * 0.7)

    x_item = compute_dtype.itemsize
    sm_item = compute_dtype.itemsize
    out_item = jnp.dtype(out_dtype).itemsize

    # ---- N (aux-predicate / output) tile -------------------------------------
    # Unpadded output when A is small (block last dim == full dim is legal and
    # avoids write amplification); lane-dense 512 tile for large A (partial
    # last block only produces discarded OOB columns).
    TN = A if A <= 512 else 512

    # ---- K (feature / reduction) tile -----------------------------------------
    # The reduction axis must never be ragged (OOB garbage would be summed into
    # the accumulator): use the full F when it fits, otherwise the largest
    # 128-multiple that divides F.
    TK = F
    if 2 * F * TN * sm_item > budget // 2:
        for cand in (2048, 1024, 512, 256, 128):
            if F % cand == 0:
                TK = cand
                break
        # TODO(synk): support ragged K (F not a multiple of 128) via an
        # in-kernel mask on the last K tile instead of falling back to TK=F.

    # ---- batch tile from the remaining VMEM budget ----------------------------
    fixed = 2 * TK * TN * sm_item                     # double-buffered sm tile
    per_row = (2 * TK * x_item                        # double-buffered x rows
               + TN * (2 * out_item + 4 + 8))         # out rows + f32 acc + epilogue tmp
    TB = (budget - fixed) // per_row
    TB = max(8, min(1024, (TB // 8) * 8))
    TB = min(TB, _round_up(B, 8))                     # don't over-tile tiny batches

    grid = (pl.cdiv(B, TB), pl.cdiv(A, TN), pl.cdiv(F, TK))

    scale = 2.0 * float(default_alpha)                # alpha is a Python scalar in the module
    kernel = functools.partial(_and_matmul_kernel, scale=scale)

    # TODO(synk): on v5e, if profiling shows exposed DMA at grid-step
    # boundaries, add pipeline_mode=pl.Buffered(3) to the x BlockSpec.
    return pl.pallas_call(
        kernel,
        out_shape=jax.ShapeDtypeStruct((B, A), out_dtype),
        grid_spec=pltpu.PrefetchScalarGridSpec(
            num_scalar_prefetch=0,
            grid=grid,
            in_specs=[
                pl.BlockSpec((TB, TK), lambda i, j, k: (i, k)),   # x batch tile
                pl.BlockSpec((TK, TN), lambda i, j, k: (k, j)),   # softmax tile
            ],
            out_specs=pl.BlockSpec((TB, TN), lambda i, j, k: (i, j)),
            scratch_shapes=[pltpu.VMEM((TB, TN), jnp.float32)],
        ),
        compiler_params=pltpu.CompilerParams(
            dimension_semantics=("parallel", "parallel", "arbitrary"),
            vmem_limit_bytes=vmem_limit,
        ),
    )(x_c, sm)


def and_layer_reference(x, weights, default_alpha=1.0):
    sm = jax.nn.softmax(weights.astype(jnp.float32), axis=0)
    biased = x.astype(jnp.float32) @ sm - 0.5
    return 2.0 * default_alpha * jnp.where(biased >= 0, biased, 0.01 * biased)


if __name__ == "__main__":
    key = jax.random.PRNGKey(0)
    kx, kw = jax.random.split(key)

    batch = 8
    number_features = 32
    number_aux_pred = 16
    default_alpha = 1.0

    # Deterministic inputs: x in [0, 1] (fuzzy truth values), weights drawn as
    # normal(mean=0, std=0.1) to mirror nn.init.normal_ in __init__.
    x = jax.random.uniform(kx, (batch, number_features), dtype=jnp.float32)
    weights = 0.1 * jax.random.normal(
        kw, (number_features, number_aux_pred), dtype=jnp.float32)

    out = and_layer_forward(x, weights, default_alpha)
    out = jax.block_until_ready(out)

    ref = and_layer_reference(x, weights, default_alpha)
    assert out.shape == (batch, number_aux_pred)
    assert jnp.allclose(out, ref, atol=1e-5, rtol=1e-5), "mismatch vs reference"

    print("KERNEL_OK")
</pallas_src>

<mosaic_0001>
module attributes {stable_mosaic.version = 11 : i64} {
  func.func @_and_matmul_kernel(%arg0: i32, %arg1: i32, %arg2: i32, %arg3: memref<8x32xf32, #tpu.memory_space<vmem>>, %arg4: memref<32x16xf32, #tpu.memory_space<vmem>>, %arg5: memref<8x16xf32, #tpu.memory_space<vmem>>, %arg6: memref<8x16xf32, #tpu.memory_space<vmem>>) attributes {dimension_semantics = [#tpu.dimension_semantics<parallel>, #tpu.dimension_semantics<parallel>, #tpu.dimension_semantics<arbitrary>], iteration_bounds = array<i64: 1, 1, 1>, scalar_prefetch = 0 : i64, scratch_operands = 1 : i64, tpu.core_type = #tpu.core_type<tc>, window_params = [{transform_indices = @transform_0, window_bounds = array<i64: 8, 32>}, {transform_indices = @transform_1, window_bounds = array<i64: 32, 16>}, {transform_indices = @transform_2, window_bounds = array<i64: 8, 16>}]} {
    %c0_i32 = arith.constant 0 : i32
    %0 = arith.cmpi eq, %arg2, %c0_i32 : i32
    %1 = arith.extui %0 : i1 to i32
    %c0_i32_0 = arith.constant 0 : i32
    %2 = arith.cmpi ne, %1, %c0_i32_0 : i32
    scf.if %2 {
      %cst_10 = arith.constant 0.000000e+00 : f32
      %12 = vector.broadcast %cst_10 : f32 to vector<8x16xf32>
      %c0_11 = arith.constant 0 : index
      %c0_12 = arith.constant 0 : index
      %13 = vector.load %arg6[%c0_11, %c0_12] : memref<8x16xf32, #tpu.memory_space<vmem>>, vector<8x16xf32>
      tpu.vector_store %arg6[%c0_11, %c0_12], %12 {strides = array<i32>} : memref<8x16xf32, #tpu.memory_space<vmem>>, vector<8x16xf32>,
    } else {
    }
    %c0 = arith.constant 0 : index
    %c0_1 = arith.constant 0 : index
    %3 = vector.load %arg6[%c0, %c0_1] : memref<8x16xf32, #tpu.memory_space<vmem>>, vector<8x16xf32>
    %c0_2 = arith.constant 0 : index
    %c0_3 = arith.constant 0 : index
    %4 = vector.load %arg3[%c0_2, %c0_3] : memref<8x32xf32, #tpu.memory_space<vmem>>, vector<8x32xf32>
    %c0_4 = arith.constant 0 : index
    %c0_5 = arith.constant 0 : index
    %5 = vector.load %arg4[%c0_4, %c0_5] : memref<32x16xf32, #tpu.memory_space<vmem>>, vector<32x16xf32>
    %cst = arith.constant dense<0.000000e+00> : vector<8x16xf32>
    %6 = tpu.matmul %4, %5, %cst {dimension_numbers = #tpu.dot_dimension_numbers<[1], [0], [0], [1], [0, 0, 1, 1], [], []>} : vector<8x32xf32>, vector<32x16xf32>, vector<8x16xf32> -> vector<8x16xf32>
    %7 = arith.addf %3, %6 : vector<8x16xf32>
    %c0_6 = arith.constant 0 : index
    %c0_7 = arith.constant 0 : index
    %8 = vector.load %arg6[%c0_6, %c0_7] : memref<8x16xf32, #tpu.memory_space<vmem>>, vector<8x16xf32>
    tpu.vector_store %arg6[%c0_6, %c0_7], %7 {strides = array<i32>} : memref<8x16xf32, #tpu.memory_space<vmem>>, vector<8x16xf32>,
    %c0_i32_8 = arith.constant 0 : i32
    %9 = arith.cmpi eq, %arg2, %c0_i32_8 : i32
    %10 = arith.extui %9 : i1 to i32
    %c0_i32_9 = arith.constant 0 : i32
    %11 = arith.cmpi ne, %10, %c0_i32_9 : i32
    scf.if %11 {
      %c0_10 = arith.constant 0 : index
      %c0_11 = arith.constant 0 : index
      %12 = vector.load %arg6[%c0_10, %c0_11] : memref<8x16xf32, #tpu.memory_space<vmem>>, vector<8x16xf32>
      %cst_12 = arith.constant 5.000000e-01 : f32
      %13 = vector.broadcast %cst_12 : f32 to vector<8x16xf32>
      %14 = arith.subf %12, %13 : vector<8x16xf32>
      %cst_13 = arith.constant 0.00999999977 : f32
      %15 = vector.broadcast %cst_13 : f32 to vector<8x16xf32>
      %16 = arith.mulf %15, %14 : vector<8x16xf32>
      %17 = arith.maximumf %14, %16 : vector<8x16xf32>
      %cst_14 = arith.constant 2.000000e+00 : f32
      %18 = vector.broadcast %cst_14 : f32 to vector<8x16xf32>
      %19 = arith.mulf %18, %17 : vector<8x16xf32>
      %c0_15 = arith.constant 0 : index
      %c0_16 = arith.constant 0 : index
      %20 = vector.load %arg5[%c0_15, %c0_16] : memref<8x16xf32, #tpu.memory_space<vmem>>, vector<8x16xf32>
      tpu.vector_store %arg5[%c0_15, %c0_16], %19 {strides = array<i32>} : memref<8x16xf32, #tpu.memory_space<vmem>>, vector<8x16xf32>,
    } else {
    }
    return
  }
  func.func @transform_0(%arg0: i32, %arg1: i32, %arg2: i32) -> (i32, i32) {
    %c0_i32 = arith.constant 0 : i32
    return %arg0, %arg2 : i32, i32
  }
  func.func @transform_1(%arg0: i32, %arg1: i32, %arg2: i32) -> (i32, i32) {
    %c0_i32 = arith.constant 0 : i32
    return %arg2, %arg1 : i32, i32
  }
  func.func @transform_2(%arg0: i32, %arg1: i32, %arg2: i32) -> (i32, i32) {
    %c0_i32 = arith.constant 0 : i32
    return %arg0, %arg1 : i32, i32
  }
}

</mosaic_0001>

<bundles_post_ra>
// kernel: tpu_custom_call.1
= control target key start
LH: loop header
LB: loop body
LE: loop exit
PB: predicated region body
PF: predicated region fallthrough
CT: control target
= control target key end

     0   :  { %vm16_vm0 = vcmask 130048   ;;  %v176_v3 = vmov 0.0|0.0   ;;  %v177_v6 = vmov 0.0   ;;  %s225_s0 = inlined_call_operand.vmem [shape: f32[8,32], index: 0, kind: input, shape index: {}]   ;;  %s226_s1 = inlined_call_operand.vmem [shape: f32[32,16], index: 1, kind: input, shape index: {}]   ;;  %s227_s2 = inlined_call_operand.hbm [shape: f32[8,16], index: 2, kind: output, shape index: {}]  }
   0x1   :  { %v20_v0 = vld [vmem:[%s226_s1] sm:$0xff]  ;;  %v21_v1 = vld [vmem:[%s226_s1 + $0x8] sm:$0xff]  ;;  %v22_v2 = vld [vmem:[%s226_s1 + $0x10] sm:$0xff]  ;;  %142 = vmatprep.subr.bf16.mxu0 %v176_v3  ;;  %17 = vst.msk [vmem:[#allocation2] sm:$0xff] %vm16_vm0, %v177_v6 }
   0x2   :  { %v143_v4 = vpack.c.bf16 %v21_v1, %v20_v0  ;;  %v23_v5 = vld [vmem:[%s226_s1 + $0x18] sm:$0xff] }
   0x3   :  { %7 = vsyncpa [#allocation4], 0  ;;  %vm178_vm1 = vmmov 0   ;;  %v146_v7 = vpack.c.bf16 %v23_v5, %v22_v2  ;;  %v19_v8 = vld [vmem:[%s225_s0] sm:$0xff]  ;;  %vm24_vm2 = vcmask 261120   ;;  %s179_s1 = smov [#allocation3]  }
   0x4   :  { %139 = vmatprep.mubr.msk.f32.mxu0 %vm178_vm1, %v177_v6  ;;  %144 = vmatpush3.bf16.msra.mxu0 %v143_v4  ;;  %s116_s19 = sshll.u32 %s179_s1, 4  ;;  %s117_s19 = int_to_ptr.vmem [resolvable:$true] %s116_s19 }
   0x5   :  { %145 = vmatprep.subr.bf16.mxu0 %v176_v3  ;;  %s152_s20 = scalar_lea.vmem %s117_s19, 128  ;;  %p157_p1 = scmp.lt.s32.totalorder %s117_s19, %s117_s19 }
   0x6   :  { %p153_p0 = scmp.ne.s32.totalorder %s117_s19, %s152_s20  ;;  %p158_p2 = scmp.lt.s32.totalorder %s152_s20, %s152_s20 }
   0x8   :  { %147 = vmatpush3.bf16.msra.mxu0 %v146_v7  ;;  %v18_v9 = vld [vmem:[#allocation2] sm:$0xff]  ;;  %p159_p3 = por %p158_p2, %p157_p1 }
   0xa   :  { %p160_p4 = pnand %p159_p3, %p153_p0 }
   0xb   :  { %140 = vmatmul.mubr.msk.f32.vlgmr.msra.gmra.mrb[0].mxu0 %vm24_vm2, %v19_v8 }
  0xde   :  { %v94_v10 = vpop.f32.mrb[0].mxu0 }
  0xdf   :  { %v98_v11 = vadd.f32 %v94_v10, %v18_v9  ;;  %v141_v12 = vpop.f32.mrb[1].mxu0 }
  0xe1   :  { %100 = vst.msk [vmem:[#allocation2] sm:$0xff] %vm16_vm0, %v98_v11 }
  0xe8   :  { %v104_v13 = vld [vmem:[#allocation2] sm:$0xff] }
  0xe9   :  { %v125_v14 = vadd.f32 -0.5, %v104_v13 }
  0xeb   :  { %v106_v15 = vmul.f32 0.01, %v125_v14 }
  0xed   :  { %v107_v16 = vmax.f32 %v125_v14, %v106_v15 }
  0xef   :  { %v108_v17 = vmul.f32 2.0, %v107_v16 }
  0xf1   :  { %109 = vst.msk [vmem:[#allocation3] sm:$0xff] %vm16_vm0, %v108_v17 }
  0xf2   :  { %163 = shalt.err (!%p160_p4)
}
  0xf3   :  { %s164_s22 = scalar_lea.hbm %s227_s2, 128 }
  0xf4   :  { %p165_p5 = scmp.ne.s32.totalorder %s227_s2, %s164_s22  ;;  %p168_p6 = scmp.lt.u32.totalorder %s164_s22, %s227_s2 }
  0xf6   :  { %p170_p7 = pnand %p168_p6, %p165_p5 }
  0xf8   :  { %173 = shalt.err (!%p170_p7)
}
  0xf9   :  { %119 = dma.vmem_to_hbm [thread:$0]  %s117_s19, 128, %s227_s2, [#allocation4]  }
  0xfa   :  { %174 = dma.done.wait [#allocation4], 128  }
  0xfb   :  { %175 = vsyncadd [#allocation4], 4294967168 }
  0xfc   :  { %123 = vsyncpa [#allocation4], 1 }

</bundles_post_ra>
